<compile_context>
chip_gen: v5e
topology: v5e:2x2
jax: 0.10.0
libtpu: 0.0.40
codegen_flags: <defaults>
</compile_context>

<pallas_src>
import jax
import jax.numpy as jnp
from jax.experimental import pallas as pl
from jax.experimental.pallas import tpu as pltpu


_SQRT_2_OVER_PI = 0.79788456


def _bias_geglu_kernel(x1_ref, x2_ref, b1_ref, b2_ref, o_ref):
    """x1/x2: (rows, hb) halves of the input, b1/b2: (1, hb), o: (rows, hb)."""
    y1 = x1_ref[...].astype(jnp.float32) + b1_ref[...].astype(jnp.float32)
    y2 = x2_ref[...].astype(jnp.float32) + b2_ref[...].astype(jnp.float32)
    g = 0.5 * y1 * (1.0 + jnp.tanh(_SQRT_2_OVER_PI * y1 * (1.0 + 0.044715 * y1 * y1)))
    # TODO(synk): if the single EUP slot (f32 tanh) ever binds on v7x, compute the
    # tanh argument/result in bf16 there and keep only the final combine in f32.
    o_ref[...] = (g * y2).astype(o_ref.dtype)


def _round_up(a, b):
    return ((a + b - 1) // b) * b


def _sublane_multiple(dtype):
    # f32 -> 8 rows/sublane-tile, bf16 -> 16, int8/fp8 -> 32.
    itemsize = jnp.dtype(dtype).itemsize
    return max(8, 32 // itemsize)


def _vmem_limit_bytes():
    # Scoped-VMEM limit: half of physical VMEM, clamped to [32 MiB, 64 MiB].
    # v5e/v6e (128 MiB physical) -> 64 MiB; v7x (64 MiB physical) -> 32 MiB.
    cap = 64 * 1024 * 1024
    try:
        info = pltpu.get_tpu_info()
        cap = int(getattr(info, "vmem_capacity_bytes", cap))
    except Exception:
        pass
    return max(32 * 1024 * 1024, min(64 * 1024 * 1024, cap // 2))


def _choose_tiles(n, h, itemsize, sub, vmem_limit):
    """Pick (rows, hb): biggest lane-dense tile whose double-buffered footprint fits."""
    budget = (vmem_limit * 3) // 4  # headroom for pipeline bookkeeping / bias blocks
    row_cap = 2048

    def max_rows(hb):
        # Double-buffered (x1 + x2 + out) blocks per grid step.
        bytes_per_row = 2 * hb * 3 * itemsize
        return ((budget // bytes_per_row) // sub) * sub

    # Prefer hb == h (no feature tiling). Only fall back to 128-multiple column
    # tiles when a full-width block would leave fewer than ~128 rows in budget.
    candidates = [h]
    if h % 128 == 0:
        candidates += [c for c in (4096, 2048, 1024, 512, 256, 128) if h % c == 0]
    hb = candidates[-1]
    for c in candidates:
        if max_rows(c) >= max(sub, 128):
            hb = c
            break

    rows = min(row_cap, max(sub, max_rows(hb)), _round_up(n, sub))
    rows = max(sub, (rows // sub) * sub)
    return rows, hb


def fused_bias_geglu(x, bias):
    """x: (..., 2H), bias: (2H,) -> (..., H), out = gelu_tanh(x1+b1) * (x2+b2)."""
    orig_shape = x.shape
    two_h = orig_shape[-1]
    assert two_h % 2 == 0, "last dimension must be even"
    assert bias.shape == (two_h,), bias.shape
    h = two_h // 2

    n = 1
    for d in orig_shape[:-1]:
        n *= d

    x2d = x.reshape(n, two_h)
    b1 = bias[:h].reshape(1, h)
    b2 = bias[h:].reshape(1, h)

    itemsize = jnp.dtype(x.dtype).itemsize
    sub = _sublane_multiple(x.dtype)
    vmem_limit = _vmem_limit_bytes()
    rows, hb = _choose_tiles(n, h, itemsize, sub, vmem_limit)

    # No wrapper padding: partial last row block is handled by Pallas
    # (padded reads, out-of-bounds output rows dropped).
    grid = (pl.cdiv(n, rows), h // hb)

    if h % 128 == 0:
        # Pass the same (N, 2H) buffer twice; the two BlockSpecs select
        # lane-aligned column windows for the two halves, so the kernel never
        # slices lanes and never stages a full-width temporary.
        half_off = h // hb
        x1_in, x2_in = x2d, x2d
        x1_spec = pl.BlockSpec((rows, hb), lambda i, j: (i, j))
        x2_spec = pl.BlockSpec((rows, hb), lambda i, j: (i, j + half_off))
    else:
        # TODO(synk): H not a multiple of 128 only occurs for non-transformer
        # shapes; split once in the wrapper so every Pallas block stays a
        # full-width, lane-contiguous tile (avoids in-kernel lane-offset slicing).
        x1_in = x2d[:, :h]
        x2_in = x2d[:, h:]
        x1_spec = pl.BlockSpec((rows, hb), lambda i, j: (i, j))
        x2_spec = pl.BlockSpec((rows, hb), lambda i, j: (i, j))

    b_spec = pl.BlockSpec((1, hb), lambda i, j: (0, j))
    o_spec = pl.BlockSpec((rows, hb), lambda i, j: (i, j))

    cost = pl.CostEstimate(
        flops=int(10 * n * h),
        transcendentals=int(n * h),
        bytes_accessed=int(
            n * two_h * itemsize + n * h * itemsize + two_h * bias.dtype.itemsize
        ),
    )

    out2d = pl.pallas_call(
        _bias_geglu_kernel,
        out_shape=jax.ShapeDtypeStruct((n, h), x.dtype),
        grid_spec=pltpu.PrefetchScalarGridSpec(
            num_scalar_prefetch=0,
            grid=grid,
            in_specs=[x1_spec, x2_spec, b_spec, b_spec],
            out_specs=o_spec,
        ),
        compiler_params=pltpu.CompilerParams(
            dimension_semantics=("parallel", "parallel"),
            vmem_limit_bytes=vmem_limit,
        ),
        cost_estimate=cost,
    )(x1_in, x2_in, b1, b2)

    return out2d.reshape(*orig_shape[:-1], h)


def _reference(x, bias):
    y = x.astype(jnp.float32) + bias.astype(jnp.float32)
    h = y.shape[-1] // 2
    y1, y2 = y[..., :h], y[..., h:]
    g = 0.5 * y1 * (1.0 + jnp.tanh(_SQRT_2_OVER_PI * y1 * (1.0 + 0.044715 * y1 * y1)))
    return (g * y2).astype(x.dtype)


if __name__ == "__main__":
    key = jax.random.PRNGKey(0)
    k_x, k_b, k_x2, k_b2, k_x3, k_b3 = jax.random.split(key, 6)

    # Case 1: lane-aligned halves, f32 (2H = 256 -> H = 128).
    batch, seq, two_h = 2, 8, 256
    x = jax.random.normal(k_x, (batch, seq, two_h), dtype=jnp.float32)
    bias = jax.random.normal(k_b, (two_h,), dtype=jnp.float32) * 0.02
    out = jax.block_until_ready(fused_bias_geglu(x, bias))
    ref = _reference(x, bias)
    assert out.shape == (batch, seq, two_h // 2), out.shape
    assert jnp.allclose(out, ref, atol=1e-5, rtol=1e-5), "mismatch (aligned f32)"

    # Case 2: bf16 input with a ragged row count (exercises the OOB-handled
    # partial row block and the f32-compute-then-cast path).
    seq_r = 25  # n = 50, not a sublane multiple
    xb = jax.random.normal(k_x3, (batch, seq_r, two_h), dtype=jnp.float32).astype(jnp.bfloat16)
    bb = (jax.random.normal(k_b3, (two_h,), dtype=jnp.float32) * 0.02).astype(jnp.bfloat16)
    outb = jax.block_until_ready(fused_bias_geglu(xb, bb))
    refb = _reference(xb, bb)
    assert outb.shape == (batch, seq_r, two_h // 2), outb.shape
    assert jnp.allclose(
        outb.astype(jnp.float32), refb.astype(jnp.float32), atol=2e-2, rtol=2e-2
    ), "mismatch (bf16 ragged)"

    # Case 3: H = 32 (not a multiple of 128) exercises the wrapper-split fallback.
    two_h_s = 64
    xs = jax.random.normal(k_x2, (batch, seq, two_h_s), dtype=jnp.float32)
    bs = jax.random.normal(k_b2, (two_h_s,), dtype=jnp.float32) * 0.02
    outs = jax.block_until_ready(fused_bias_geglu(xs, bs))
    refs = _reference(xs, bs)
    assert outs.shape == (batch, seq, two_h_s // 2), outs.shape
    assert jnp.allclose(outs, refs, atol=1e-5, rtol=1e-5), "mismatch (fallback path)"

    print("KERNEL_OK")
</pallas_src>

<mosaic_0001>
module attributes {stable_mosaic.version = 11 : i64} {
  func.func @_bias_geglu_kernel(%arg0: i32, %arg1: i32, %arg2: memref<16x128xf32, #tpu.memory_space<vmem>>, %arg3: memref<16x128xf32, #tpu.memory_space<vmem>>, %arg4: memref<1x128xf32, #tpu.memory_space<vmem>>, %arg5: memref<1x128xf32, #tpu.memory_space<vmem>>, %arg6: memref<16x128xf32, #tpu.memory_space<vmem>>) attributes {dimension_semantics = [#tpu.dimension_semantics<parallel>, #tpu.dimension_semantics<parallel>], iteration_bounds = array<i64: 1, 1>, scalar_prefetch = 0 : i64, scratch_operands = 0 : i64, tpu.core_type = #tpu.core_type<tc>, window_params = [{transform_indices = @transform_0, window_bounds = array<i64: 16, 128>}, {transform_indices = @transform_1, window_bounds = array<i64: 16, 128>}, {transform_indices = @transform_2, window_bounds = array<i64: 1, 128>}, {transform_indices = @transform_3, window_bounds = array<i64: 1, 128>}, {transform_indices = @transform_4, window_bounds = array<i64: 16, 128>}]} {
    %c0 = arith.constant 0 : index
    %c0_0 = arith.constant 0 : index
    %0 = vector.load %arg2[%c0, %c0_0] : memref<16x128xf32, #tpu.memory_space<vmem>>, vector<16x128xf32>
    %c0_1 = arith.constant 0 : index
    %c0_2 = arith.constant 0 : index
    %1 = vector.load %arg4[%c0_1, %c0_2] : memref<1x128xf32, #tpu.memory_space<vmem>>, vector<1x128xf32>
    %2 = vector.broadcast %1 : vector<1x128xf32> to vector<16x128xf32>
    %3 = arith.addf %0, %2 : vector<16x128xf32>
    %c0_3 = arith.constant 0 : index
    %c0_4 = arith.constant 0 : index
    %4 = vector.load %arg3[%c0_3, %c0_4] : memref<16x128xf32, #tpu.memory_space<vmem>>, vector<16x128xf32>
    %c0_5 = arith.constant 0 : index
    %c0_6 = arith.constant 0 : index
    %5 = vector.load %arg5[%c0_5, %c0_6] : memref<1x128xf32, #tpu.memory_space<vmem>>, vector<1x128xf32>
    %6 = vector.broadcast %5 : vector<1x128xf32> to vector<16x128xf32>
    %7 = arith.addf %4, %6 : vector<16x128xf32>
    %cst = arith.constant 5.000000e-01 : f32
    %8 = vector.broadcast %cst : f32 to vector<16x128xf32>
    %9 = arith.mulf %8, %3 : vector<16x128xf32>
    %cst_7 = arith.constant 0.797884583 : f32
    %10 = vector.broadcast %cst_7 : f32 to vector<16x128xf32>
    %11 = arith.mulf %10, %3 : vector<16x128xf32>
    %cst_8 = arith.constant 4.471500e-02 : f32
    %12 = vector.broadcast %cst_8 : f32 to vector<16x128xf32>
    %13 = arith.mulf %12, %3 : vector<16x128xf32>
    %14 = arith.mulf %13, %3 : vector<16x128xf32>
    %cst_9 = arith.constant 1.000000e+00 : f32
    %15 = vector.broadcast %cst_9 : f32 to vector<16x128xf32>
    %16 = arith.addf %15, %14 : vector<16x128xf32>
    %17 = arith.mulf %11, %16 : vector<16x128xf32>
    %18 = math.tanh %17 : vector<16x128xf32>
    %cst_10 = arith.constant 1.000000e+00 : f32
    %19 = vector.broadcast %cst_10 : f32 to vector<16x128xf32>
    %20 = arith.addf %19, %18 : vector<16x128xf32>
    %21 = arith.mulf %9, %20 : vector<16x128xf32>
    %22 = arith.mulf %21, %7 : vector<16x128xf32>
    %c0_11 = arith.constant 0 : index
    %c0_12 = arith.constant 0 : index
    %23 = vector.load %arg6[%c0_11, %c0_12] : memref<16x128xf32, #tpu.memory_space<vmem>>, vector<16x128xf32>
    tpu.vector_store %arg6[%c0_11, %c0_12], %22 {strides = array<i32>} : memref<16x128xf32, #tpu.memory_space<vmem>>, vector<16x128xf32>,
    return
  }
  func.func @transform_0(%arg0: i32, %arg1: i32) -> (i32, i32) {
    %c0_i32 = arith.constant 0 : i32
    return %arg0, %arg1 : i32, i32
  }
  func.func @transform_1(%arg0: i32, %arg1: i32) -> (i32, i32) {
    %c1_i32 = arith.constant 1 : i32
    %0 = arith.addi %arg1, %c1_i32 : i32
    %c0_i32 = arith.constant 0 : i32
    return %arg0, %0 : i32, i32
  }
  func.func @transform_2(%arg0: i32, %arg1: i32) -> (i32, i32) {
    %c0_i32 = arith.constant 0 : i32
    %c0_i32_0 = arith.constant 0 : i32
    return %c0_i32, %arg1 : i32, i32
  }
  func.func @transform_3(%arg0: i32, %arg1: i32) -> (i32, i32) {
    %c0_i32 = arith.constant 0 : i32
    %c0_i32_0 = arith.constant 0 : i32
    return %c0_i32, %arg1 : i32, i32
  }
  func.func @transform_4(%arg0: i32, %arg1: i32) -> (i32, i32) {
    %c0_i32 = arith.constant 0 : i32
    return %arg0, %arg1 : i32, i32
  }
}

</mosaic_0001>

<bundles_post_ra>
// kernel: tpu_custom_call.1
= control target key start
LH: loop header
LB: loop body
LE: loop exit
PB: predicated region body
PF: predicated region fallthrough
CT: control target
= control target key end

     0   :  { %9 = vsyncpa [#allocation3], 0  ;;  %s256_s0 = inlined_call_operand.hbm [shape: f32[16,256], index: 0, kind: input, shape index: {}]   ;;  %s257_s1 = inlined_call_operand.hbm [shape: f32[16,256], index: 1, kind: input, shape index: {}]   ;;  %s258_s2 = inlined_call_operand.vmem [shape: f32[1,128], index: 2, kind: input, shape index: {}]   ;;  %s259_s3 = inlined_call_operand.vmem [shape: f32[1,128], index: 3, kind: input, shape index: {}]   ;;  %s260_s4 = inlined_call_operand.hbm [shape: f32[16,128], index: 4, kind: output, shape index: {}]  }
   0x1   :  { %10 = vsyncpa [#allocation6], 0 }
   0x2   :  { %11 = vsyncpa [#allocation4], 0  ;;  %s16_s17 = sshll.u32 %s256_s0, 4  ;;  %s203_s18 = smov [#allocation2]   ;;  %s17_s17 = int_to_ptr.hbm [resolvable:$true] %s16_s17 }
   0x3   :  { %s18_s19 = sshll.u32 %s203_s18, 4  ;;  %s204_s20 = smov 256   ;;  %s19_s19 = int_to_ptr.vmem [resolvable:$true] %s18_s19 }
   0x4   :  { %s205_s21 = smov 128   ;;  %s206_s22 = smov 8  }
   0x5   :  { %24 = dma.hbm_to_vmem [thread:$0]  %s17_s17, 256, %s19_s19, [#allocation3], %s204_s20, %s205_s21, %s206_s22  }
   0x6   :  { %s112_s25 = scalar_lea.hbm %s257_s1, 8  ;;  %s207_s27 = smov [#allocation5]  }
   0x7   :  { %s32_s26 = sshll.u32 %s112_s25, 4  ;;  %s34_s28 = sshll.u32 %s207_s27, 4  ;;  %s33_s26 = int_to_ptr.hbm [resolvable:$true] %s32_s26  ;;  %s35_s28 = int_to_ptr.vmem [resolvable:$true] %s34_s28 }
   0x8   :  { %40 = dma.hbm_to_vmem [thread:$0]  %s33_s26, 256, %s35_s28, [#allocation6], %s204_s20, %s205_s21, %s206_s22  }
   0x9   :  { %197 = dma.done.wait [#allocation3], 256  }
   0xa   :  { %198 = vsyncadd [#allocation3], 4294967040 }
   0xb   :  { %199 = dma.done.wait [#allocation6], 256  }
   0xc   :  { %200 = vsyncadd [#allocation6], 4294967040  ;;  %v54_v0 = vld [vmem:[#allocation2] sm:$0xff]  ;;  %v55_v3 = vld [vmem:[#allocation2 + $0x8] sm:$0xff]  ;;  %s98_s8 = sshll.u32 %s260_s4, 4  ;;  %s99_s8 = int_to_ptr.hbm [resolvable:$true] %s98_s8 }
   0xd   :  { %v119_v1 = vld [vmem:[%s258_s2] ss:$0 sm:$0xff]  ;;  %v62_v16 = vld [vmem:[#allocation5] sm:$0xff]  ;;  %v63_v18 = vld [vmem:[#allocation5 + $0x8] sm:$0xff]  ;;  %s208_s2 = smov [#allocation7]  }
   0xe   :  { %v60_v2 = vadd.f32 %v119_v1, %v54_v0  ;;  %v61_v4 = vadd.f32 %v119_v1, %v55_v3  ;;  %v120_v15 = vld [vmem:[%s259_s3] ss:$0 sm:$0xff]  ;;  %s96_s5 = sshll.u32 %s208_s2, 4  ;;  %s97_s5 = int_to_ptr.vmem [resolvable:$true] %s96_s5 }
   0xf   :  { %v68_v22 = vadd.f32 %v120_v15, %v62_v16  ;;  %v69_v24 = vadd.f32 %v120_v15, %v63_v18 }
  0x10   :  { %v74_v5 = vmul.f32 0.044715, %v60_v2  ;;  %v75_v6 = vmul.f32 0.044715, %v61_v4  ;;  %v72_v7 = vmul.f32 0.7978846, %v60_v2 }
  0x11   :  { %v73_v9 = vmul.f32 0.7978846, %v61_v4  ;;  %v70_v17 = vmul.f32 0.5, %v60_v2  ;;  %v71_v20 = vmul.f32 0.5, %v61_v4 }
  0x12   :  { %v76_v8 = vmul.f32 %v74_v5, %v60_v2  ;;  %v77_v10 = vmul.f32 %v75_v6, %v61_v4 }
  0x14   :  { %v78_v11 = vadd.f32 1.0, %v76_v8  ;;  %v79_v12 = vadd.f32 1.0, %v77_v10 }
  0x16   :  { %v80_v13 = vmul.f32 %v78_v11, %v72_v7  ;;  %v81_v14 = vmul.f32 %v79_v12, %v73_v9 }
  0x18   :  { %121 = vtanh.f32 %v80_v13 }
  0x19   :  { %123 = vtanh.f32 %v81_v14 }
  0x1e   :  { %v122_v19 = vpop.eup %121 }
  0x1f   :  { %v124_v21 = vpop.eup %123  ;;  %v84_v23 = vadd.f32 1.0, %v122_v19 }
  0x20   :  { %v85_v25 = vadd.f32 1.0, %v124_v21 }
  0x21   :  { %v86_v26 = vmul.f32 %v84_v23, %v70_v17 }
  0x22   :  { %v87_v27 = vmul.f32 %v85_v25, %v71_v20 }
  0x23   :  { %v88_v28 = vmul.f32 %v86_v26, %v68_v22 }
  0x24   :  { %v89_v29 = vmul.f32 %v87_v27, %v69_v24 }
  0x25   :  { %90 = vst [vmem:[#allocation7] sm:$0xff] %v88_v28 }
  0x26   :  { %91 = vst [vmem:[#allocation7 + $0x8] sm:$0xff] %v89_v29 }
  0x27   :  { %104 = dma.vmem_to_hbm [thread:$0]  %s97_s5, 256, %s99_s8, [#allocation4], %s205_s21, %s205_s21, %s206_s22  }
  0x28   :  { %201 = dma.done.wait [#allocation4], 256  }
  0x29   :  { %202 = vsyncadd [#allocation4], 4294967040 }
  0x2a   :  { %109 = vsyncpa [#allocation3], 1 }
  0x2b   :  { %110 = vsyncpa [#allocation6], 1 }
  0x2c   :  { %111 = vsyncpa [#allocation4], 1 }

</bundles_post_ra>
